<compile_context>
chip_gen: v7x
topology: tpu7x:2x2x1
jax: 0.10.0
libtpu: 0.0.40
codegen_flags: <defaults>
</compile_context>

<pallas_src>
import math

import jax
import jax.numpy as jnp
from jax import lax
from jax.experimental import pallas as pl
from jax.experimental.pallas import tpu as pltpu

# ---------------- problem sizes (small, consistent with the module) ----------
BATCH = 2
SEQ = 8
DIM_MODEL = 32          # dim_model == dim_key == dim_value (defaults)
NUM_HEADS = 4
DIM_KEY = DIM_MODEL
DIM_VALUE = DIM_MODEL
DK_HEAD = DIM_KEY // NUM_HEADS     # per-head key/query dim
DV_HEAD = DIM_VALUE // NUM_HEADS   # per-head value dim
QKV_DIM = 2 * DIM_KEY + DIM_VALUE  # fused projection output width


# ---------------- Pallas kernel ----------------------------------------------
def mha_kernel(x_ref, wqkv_ref, bqkv_ref, wo_ref, bo_ref, out_ref):
    """Single invocation: fused QKV projection + per-(batch, head) SDPA whose
    head-combine is folded into the output projection.
    x_ref holds the batch-folded [BATCH*SEQ, DIM_MODEL] input."""
    x = x_ref[...]                                              # [B*S, D]

    # fused q/k/v projection: one MXU matmul, 96 output lanes.
    # (1/sqrt(d_k) is already folded into the q columns / bias wrapper-side.)
    qkv = jnp.dot(x, wqkv_ref[...],
                  preferred_element_type=jnp.float32) + bqkv_ref[...]

    wo = wo_ref[...]                                            # [DIM_VALUE, DIM_VALUE]
    bo = bo_ref[...]                                            # [1, DIM_VALUE]

    for b in range(BATCH):
        r0 = b * SEQ
        acc = None
        for h in range(NUM_HEADS):
            qh = qkv[r0:r0 + SEQ, h * DK_HEAD:(h + 1) * DK_HEAD]
            kh = qkv[r0:r0 + SEQ,
                     DIM_KEY + h * DK_HEAD:DIM_KEY + (h + 1) * DK_HEAD]
            vh = qkv[r0:r0 + SEQ,
                     2 * DIM_KEY + h * DV_HEAD:2 * DIM_KEY + (h + 1) * DV_HEAD]

            # q k^T with the contraction on dim 1 of both operands: no kh.T.
            scores = lax.dot_general(
                qh, kh, (((1,), (1,)), ((), ())),
                preferred_element_type=jnp.float32)             # [S, S]

            scores = scores - jnp.max(scores, axis=-1, keepdims=True)
            p = jnp.exp(scores)
            denom = jnp.sum(p, axis=-1, keepdims=True)
            p = p * pl.reciprocal(denom, approx=True)           # EUP, not VPU divide

            zh = jnp.dot(p, vh, preferred_element_type=jnp.float32)   # [S, dv]
            # _combine_heads + out-proj folded: z_h @ Wo[h-th row block]
            contrib = jnp.dot(zh, wo[h * DV_HEAD:(h + 1) * DV_HEAD, :],
                              preferred_element_type=jnp.float32)
            acc = contrib if acc is None else acc + contrib

        out_ref[r0:r0 + SEQ, :] = (acc + bo).astype(out_ref.dtype)


def multi_head_attention(x, wq, bq, wk, bk, wv, bv, wo, bo):
    """x: [B, S, DIM_MODEL] -> [B, S, DIM_VALUE]."""
    B, S, D = x.shape
    inv_sqrt_dk = 1.0 / math.sqrt(DK_HEAD)

    # Wrapper-side weight prep (would be done once at init in a real model):
    # fuse q/k/v projections and fold the attention scale into Wq / bq.
    wqkv = jnp.concatenate([wq * inv_sqrt_dk, wk, wv], axis=1)   # [D, QKV_DIM]
    bqkv = jnp.concatenate([bq * inv_sqrt_dk, bk, bv], axis=1)   # [1, QKV_DIM]

    x_flat = x.reshape(B * S, D)     # fold batch into rows -> single grid step
    full2d = lambda i: (0, 0)

    out_flat = pl.pallas_call(
        mha_kernel,
        out_shape=jax.ShapeDtypeStruct((B * S, DIM_VALUE), x.dtype),
        grid_spec=pltpu.PrefetchScalarGridSpec(
            num_scalar_prefetch=0,
            grid=(1,),
            in_specs=[
                pl.BlockSpec((B * S, D), full2d),              # x (batch-folded)
                pl.BlockSpec((D, QKV_DIM), full2d),            # Wqkv (q cols pre-scaled)
                pl.BlockSpec((1, QKV_DIM), full2d),            # bqkv
                pl.BlockSpec((DIM_VALUE, DIM_VALUE), full2d),  # Wo
                pl.BlockSpec((1, DIM_VALUE), full2d),          # bo
            ],
            out_specs=pl.BlockSpec((B * S, DIM_VALUE), full2d),
        ),
        compiler_params=pltpu.CompilerParams(
            dimension_semantics=("arbitrary",)),
    )(x_flat, wqkv, bqkv, wo, bo)

    return out_flat.reshape(B, S, DIM_VALUE)


# ---------------- pure-JAX reference (for verification) ----------------------
def reference(x, wq, bq, wk, bk, wv, bv, wo, bo):
    q = x @ wq + bq
    k = x @ wk + bk
    v = x @ wv + bv
    B, S, _ = x.shape

    def split(t, dh):
        return t.reshape(B, S, NUM_HEADS, dh).transpose(0, 2, 1, 3)

    qh, kh, vh = split(q, DK_HEAD), split(k, DK_HEAD), split(v, DV_HEAD)
    scores = jnp.einsum("bhqd,bhkd->bhqk", qh, kh) / math.sqrt(DK_HEAD)
    p = jax.nn.softmax(scores, axis=-1)
    z = jnp.einsum("bhqk,bhkd->bhqd", p, vh)
    z = z.transpose(0, 2, 1, 3).reshape(B, S, DIM_VALUE)
    return z @ wo + bo


# ---------------- driver ------------------------------------------------------
if __name__ == "__main__":
    key = jax.random.PRNGKey(0)
    ks = jax.random.split(key, 8)

    x = jax.random.normal(ks[0], (BATCH, SEQ, DIM_MODEL), dtype=jnp.float32)

    # deterministic parameter init (Linear weights stored as [in, out])
    scale = 1.0 / math.sqrt(DIM_MODEL)
    wq = jax.random.uniform(ks[1], (DIM_MODEL, DIM_KEY), jnp.float32, -scale, scale)
    bq = jax.random.uniform(ks[2], (1, DIM_KEY), jnp.float32, -scale, scale)
    wk = jax.random.uniform(ks[3], (DIM_MODEL, DIM_KEY), jnp.float32, -scale, scale)
    bk = jax.random.uniform(ks[4], (1, DIM_KEY), jnp.float32, -scale, scale)
    wv = jax.random.uniform(ks[5], (DIM_MODEL, DIM_VALUE), jnp.float32, -scale, scale)
    bv = jax.random.uniform(ks[6], (1, DIM_VALUE), jnp.float32, -scale, scale)
    wo = jax.random.uniform(ks[7], (DIM_VALUE, DIM_VALUE), jnp.float32, -scale, scale)
    bo = jnp.zeros((1, DIM_VALUE), jnp.float32)   # constant_(self.proj.bias, 0.0)

    out = multi_head_attention(x, wq, bq, wk, bk, wv, bv, wo, bo)
    out = jax.block_until_ready(out)

    ref = reference(x, wq, bq, wk, bk, wv, bv, wo, bo)
    assert out.shape == (BATCH, SEQ, DIM_VALUE)
    # tolerance loosened slightly vs exact-divide version because the softmax
    # denominator uses the EUP approximate reciprocal.
    assert jnp.allclose(out, ref, atol=5e-3, rtol=5e-3), "mismatch vs reference"

    print("KERNEL_OK")
</pallas_src>

<mosaic_0001>
module attributes {stable_mosaic.version = 11 : i64} {
  func.func @mha_kernel(%arg0: i32, %arg1: memref<16x32xf32, #tpu.memory_space<vmem>>, %arg2: memref<32x96xf32, #tpu.memory_space<vmem>>, %arg3: memref<1x96xf32, #tpu.memory_space<vmem>>, %arg4: memref<32x32xf32, #tpu.memory_space<vmem>>, %arg5: memref<1x32xf32, #tpu.memory_space<vmem>>, %arg6: memref<16x32xf32, #tpu.memory_space<vmem>>) attributes {dimension_semantics = [#tpu.dimension_semantics<arbitrary>], iteration_bounds = array<i64: 1>, scalar_prefetch = 0 : i64, scratch_operands = 0 : i64, tpu.core_type = #tpu.core_type<tc>, window_params = [{pipeline_mode = #tpu.pipeline_mode<synchronous>, transform_indices = @transform_0, window_bounds = array<i64: 16, 32>}, {pipeline_mode = #tpu.pipeline_mode<synchronous>, transform_indices = @transform_1, window_bounds = array<i64: 32, 96>}, {pipeline_mode = #tpu.pipeline_mode<synchronous>, transform_indices = @transform_2, window_bounds = array<i64: 1, 96>}, {pipeline_mode = #tpu.pipeline_mode<synchronous>, transform_indices = @transform_3, window_bounds = array<i64: 32, 32>}, {pipeline_mode = #tpu.pipeline_mode<synchronous>, transform_indices = @transform_4, window_bounds = array<i64: 1, 32>}, {pipeline_mode = #tpu.pipeline_mode<synchronous>, transform_indices = @transform_5, window_bounds = array<i64: 16, 32>}]} {
    %c0 = arith.constant 0 : index
    %c0_0 = arith.constant 0 : index
    %0 = vector.load %arg1[%c0, %c0_0] : memref<16x32xf32, #tpu.memory_space<vmem>>, vector<16x32xf32>
    %c0_1 = arith.constant 0 : index
    %c0_2 = arith.constant 0 : index
    %1 = vector.load %arg2[%c0_1, %c0_2] : memref<32x96xf32, #tpu.memory_space<vmem>>, vector<32x96xf32>
    %cst = arith.constant dense<0.000000e+00> : vector<16x96xf32>
    %2 = tpu.matmul %0, %1, %cst {dimension_numbers = #tpu.dot_dimension_numbers<[1], [0], [0], [1], [0, 0, 1, 1], [], []>} : vector<16x32xf32>, vector<32x96xf32>, vector<16x96xf32> -> vector<16x96xf32>
    %c0_3 = arith.constant 0 : index
    %c0_4 = arith.constant 0 : index
    %3 = vector.load %arg3[%c0_3, %c0_4] : memref<1x96xf32, #tpu.memory_space<vmem>>, vector<1x96xf32>
    %4 = vector.broadcast %3 : vector<1x96xf32> to vector<16x96xf32>
    %5 = arith.addf %2, %4 : vector<16x96xf32>
    %c0_5 = arith.constant 0 : index
    %c0_6 = arith.constant 0 : index
    %6 = vector.load %arg4[%c0_5, %c0_6] : memref<32x32xf32, #tpu.memory_space<vmem>>, vector<32x32xf32>
    %c0_7 = arith.constant 0 : index
    %c0_8 = arith.constant 0 : index
    %7 = vector.load %arg5[%c0_7, %c0_8] : memref<1x32xf32, #tpu.memory_space<vmem>>, vector<1x32xf32>
    %8 = vector.extract_strided_slice %5 {offsets = [0, 0], sizes = [8, 8], strides = [1, 1]} : vector<16x96xf32> to vector<8x8xf32>
    %9 = vector.extract_strided_slice %5 {offsets = [0, 32], sizes = [8, 8], strides = [1, 1]} : vector<16x96xf32> to vector<8x8xf32>
    %10 = vector.extract_strided_slice %5 {offsets = [0, 64], sizes = [8, 8], strides = [1, 1]} : vector<16x96xf32> to vector<8x8xf32>
    %cst_9 = arith.constant dense<0.000000e+00> : vector<8x8xf32>
    %11 = tpu.matmul %8, %9, %cst_9 {dimension_numbers = #tpu.dot_dimension_numbers<[1], [1], [0], [0], [0, 0, 1, 0], [], []>} : vector<8x8xf32>, vector<8x8xf32>, vector<8x8xf32> -> vector<8x8xf32>
    %cst_10 = arith.constant dense<0xFF800000> : vector<8xf32>
    %12 = vector.multi_reduction <maximumf>, %11, %cst_10 [1] : vector<8x8xf32> to vector<8xf32>
    %13 = vector.shape_cast %12 : vector<8xf32> to vector<8x1xf32>
    %14 = vector.broadcast %13 : vector<8x1xf32> to vector<8x8xf32>
    %15 = arith.subf %11, %14 : vector<8x8xf32>
    %16 = math.exp %15 : vector<8x8xf32>
    %cst_11 = arith.constant dense<0.000000e+00> : vector<8xf32>
    %17 = vector.multi_reduction <add>, %16, %cst_11 [1] : vector<8x8xf32> to vector<8xf32>
    %18 = vector.shape_cast %17 : vector<8xf32> to vector<8x1xf32>
    %19 = tpu.reciprocal %18 {approx = true} : vector<8x1xf32> -> vector<8x1xf32>
    %20 = vector.broadcast %19 : vector<8x1xf32> to vector<8x8xf32>
    %21 = arith.mulf %16, %20 : vector<8x8xf32>
    %cst_12 = arith.constant dense<0.000000e+00> : vector<8x8xf32>
    %22 = tpu.matmul %21, %10, %cst_12 {dimension_numbers = #tpu.dot_dimension_numbers<[1], [0], [0], [1], [0, 0, 1, 1], [], []>} : vector<8x8xf32>, vector<8x8xf32>, vector<8x8xf32> -> vector<8x8xf32>
    %23 = vector.extract_strided_slice %6 {offsets = [0, 0], sizes = [8, 32], strides = [1, 1]} : vector<32x32xf32> to vector<8x32xf32>
    %cst_13 = arith.constant dense<0.000000e+00> : vector<8x32xf32>
    %24 = tpu.matmul %22, %23, %cst_13 {dimension_numbers = #tpu.dot_dimension_numbers<[1], [0], [0], [1], [0, 0, 1, 1], [], []>} : vector<8x8xf32>, vector<8x32xf32>, vector<8x32xf32> -> vector<8x32xf32>
    %25 = vector.extract_strided_slice %5 {offsets = [0, 8], sizes = [8, 8], strides = [1, 1]} : vector<16x96xf32> to vector<8x8xf32>
    %26 = vector.extract_strided_slice %5 {offsets = [0, 40], sizes = [8, 8], strides = [1, 1]} : vector<16x96xf32> to vector<8x8xf32>
    %27 = vector.extract_strided_slice %5 {offsets = [0, 72], sizes = [8, 8], strides = [1, 1]} : vector<16x96xf32> to vector<8x8xf32>
    %cst_14 = arith.constant dense<0.000000e+00> : vector<8x8xf32>
    %28 = tpu.matmul %25, %26, %cst_14 {dimension_numbers = #tpu.dot_dimension_numbers<[1], [1], [0], [0], [0, 0, 1, 0], [], []>} : vector<8x8xf32>, vector<8x8xf32>, vector<8x8xf32> -> vector<8x8xf32>
    %cst_15 = arith.constant dense<0xFF800000> : vector<8xf32>
    %29 = vector.multi_reduction <maximumf>, %28, %cst_15 [1] : vector<8x8xf32> to vector<8xf32>
    %30 = vector.shape_cast %29 : vector<8xf32> to vector<8x1xf32>
    %31 = vector.broadcast %30 : vector<8x1xf32> to vector<8x8xf32>
    %32 = arith.subf %28, %31 : vector<8x8xf32>
    %33 = math.exp %32 : vector<8x8xf32>
    %cst_16 = arith.constant dense<0.000000e+00> : vector<8xf32>
    %34 = vector.multi_reduction <add>, %33, %cst_16 [1] : vector<8x8xf32> to vector<8xf32>
    %35 = vector.shape_cast %34 : vector<8xf32> to vector<8x1xf32>
    %36 = tpu.reciprocal %35 {approx = true} : vector<8x1xf32> -> vector<8x1xf32>
    %37 = vector.broadcast %36 : vector<8x1xf32> to vector<8x8xf32>
    %38 = arith.mulf %33, %37 : vector<8x8xf32>
    %cst_17 = arith.constant dense<0.000000e+00> : vector<8x8xf32>
    %39 = tpu.matmul %38, %27, %cst_17 {dimension_numbers = #tpu.dot_dimension_numbers<[1], [0], [0], [1], [0, 0, 1, 1], [], []>} : vector<8x8xf32>, vector<8x8xf32>, vector<8x8xf32> -> vector<8x8xf32>
    %40 = vector.extract_strided_slice %6 {offsets = [8, 0], sizes = [8, 32], strides = [1, 1]} : vector<32x32xf32> to vector<8x32xf32>
    %cst_18 = arith.constant dense<0.000000e+00> : vector<8x32xf32>
    %41 = tpu.matmul %39, %40, %cst_18 {dimension_numbers = #tpu.dot_dimension_numbers<[1], [0], [0], [1], [0, 0, 1, 1], [], []>} : vector<8x8xf32>, vector<8x32xf32>, vector<8x32xf32> -> vector<8x32xf32>
    %42 = arith.addf %24, %41 : vector<8x32xf32>
    %43 = vector.extract_strided_slice %5 {offsets = [0, 16], sizes = [8, 8], strides = [1, 1]} : vector<16x96xf32> to vector<8x8xf32>
    %44 = vector.extract_strided_slice %5 {offsets = [0, 48], sizes = [8, 8], strides = [1, 1]} : vector<16x96xf32> to vector<8x8xf32>
    %45 = vector.extract_strided_slice %5 {offsets = [0, 80], sizes = [8, 8], strides = [1, 1]} : vector<16x96xf32> to vector<8x8xf32>
    %cst_19 = arith.constant dense<0.000000e+00> : vector<8x8xf32>
    %46 = tpu.matmul %43, %44, %cst_19 {dimension_numbers = #tpu.dot_dimension_numbers<[1], [1], [0], [0], [0, 0, 1, 0], [], []>} : vector<8x8xf32>, vector<8x8xf32>, vector<8x8xf32> -> vector<8x8xf32>
    %cst_20 = arith.constant dense<0xFF800000> : vector<8xf32>
    %47 = vector.multi_reduction <maximumf>, %46, %cst_20 [1] : vector<8x8xf32> to vector<8xf32>
    %48 = vector.shape_cast %47 : vector<8xf32> to vector<8x1xf32>
    %49 = vector.broadcast %48 : vector<8x1xf32> to vector<8x8xf32>
    %50 = arith.subf %46, %49 : vector<8x8xf32>
    %51 = math.exp %50 : vector<8x8xf32>
    %cst_21 = arith.constant dense<0.000000e+00> : vector<8xf32>
    %52 = vector.multi_reduction <add>, %51, %cst_21 [1] : vector<8x8xf32> to vector<8xf32>
    %53 = vector.shape_cast %52 : vector<8xf32> to vector<8x1xf32>
    %54 = tpu.reciprocal %53 {approx = true} : vector<8x1xf32> -> vector<8x1xf32>
    %55 = vector.broadcast %54 : vector<8x1xf32> to vector<8x8xf32>
    %56 = arith.mulf %51, %55 : vector<8x8xf32>
    %cst_22 = arith.constant dense<0.000000e+00> : vector<8x8xf32>
    %57 = tpu.matmul %56, %45, %cst_22 {dimension_numbers = #tpu.dot_dimension_numbers<[1], [0], [0], [1], [0, 0, 1, 1], [], []>} : vector<8x8xf32>, vector<8x8xf32>, vector<8x8xf32> -> vector<8x8xf32>
    %58 = vector.extract_strided_slice %6 {offsets = [16, 0], sizes = [8, 32], strides = [1, 1]} : vector<32x32xf32> to vector<8x32xf32>
    %cst_23 = arith.constant dense<0.000000e+00> : vector<8x32xf32>
    %59 = tpu.matmul %57, %58, %cst_23 {dimension_numbers = #tpu.dot_dimension_numbers<[1], [0], [0], [1], [0, 0, 1, 1], [], []>} : vector<8x8xf32>, vector<8x32xf32>, vector<8x32xf32> -> vector<8x32xf32>
    %60 = arith.addf %42, %59 : vector<8x32xf32>
    %61 = vector.extract_strided_slice %5 {offsets = [0, 24], sizes = [8, 8], strides = [1, 1]} : vector<16x96xf32> to vector<8x8xf32>
    %62 = vector.extract_strided_slice %5 {offsets = [0, 56], sizes = [8, 8], strides = [1, 1]} : vector<16x96xf32> to vector<8x8xf32>
    %63 = vector.extract_strided_slice %5 {offsets = [0, 88], sizes = [8, 8], strides = [1, 1]} : vector<16x96xf32> to vector<8x8xf32>
    %cst_24 = arith.constant dense<0.000000e+00> : vector<8x8xf32>
    %64 = tpu.matmul %61, %62, %cst_24 {dimension_numbers = #tpu.dot_dimension_numbers<[1], [1], [0], [0], [0, 0, 1, 0], [], []>} : vector<8x8xf32>, vector<8x8xf32>, vector<8x8xf32> -> vector<8x8xf32>
    %cst_25 = arith.constant dense<0xFF800000> : vector<8xf32>
    %65 = vector.multi_reduction <maximumf>, %64, %cst_25 [1] : vector<8x8xf32> to vector<8xf32>
    %66 = vector.shape_cast %65 : vector<8xf32> to vector<8x1xf32>
    %67 = vector.broadcast %66 : vector<8x1xf32> to vector<8x8xf32>
    %68 = arith.subf %64, %67 : vector<8x8xf32>
    %69 = math.exp %68 : vector<8x8xf32>
    %cst_26 = arith.constant dense<0.000000e+00> : vector<8xf32>
    %70 = vector.multi_reduction <add>, %69, %cst_26 [1] : vector<8x8xf32> to vector<8xf32>
    %71 = vector.shape_cast %70 : vector<8xf32> to vector<8x1xf32>
    %72 = tpu.reciprocal %71 {approx = true} : vector<8x1xf32> -> vector<8x1xf32>
    %73 = vector.broadcast %72 : vector<8x1xf32> to vector<8x8xf32>
    %74 = arith.mulf %69, %73 : vector<8x8xf32>
    %cst_27 = arith.constant dense<0.000000e+00> : vector<8x8xf32>
    %75 = tpu.matmul %74, %63, %cst_27 {dimension_numbers = #tpu.dot_dimension_numbers<[1], [0], [0], [1], [0, 0, 1, 1], [], []>} : vector<8x8xf32>, vector<8x8xf32>, vector<8x8xf32> -> vector<8x8xf32>
    %76 = vector.extract_strided_slice %6 {offsets = [24, 0], sizes = [8, 32], strides = [1, 1]} : vector<32x32xf32> to vector<8x32xf32>
    %cst_28 = arith.constant dense<0.000000e+00> : vector<8x32xf32>
    %77 = tpu.matmul %75, %76, %cst_28 {dimension_numbers = #tpu.dot_dimension_numbers<[1], [0], [0], [1], [0, 0, 1, 1], [], []>} : vector<8x8xf32>, vector<8x32xf32>, vector<8x32xf32> -> vector<8x32xf32>
    %78 = arith.addf %60, %77 : vector<8x32xf32>
    %79 = vector.broadcast %7 : vector<1x32xf32> to vector<8x32xf32>
    %80 = arith.addf %78, %79 : vector<8x32xf32>
    %c0_29 = arith.constant 0 : index
    %c0_30 = arith.constant 0 : index
    %81 = vector.load %arg6[%c0_29, %c0_30] : memref<16x32xf32, #tpu.memory_space<vmem>>, vector<8x32xf32>
    tpu.vector_store %arg6[%c0_29, %c0_30], %80 {strides = array<i32>} : memref<16x32xf32, #tpu.memory_space<vmem>>, vector<8x32xf32>,
    %82 = vector.extract_strided_slice %5 {offsets = [8, 0], sizes = [8, 8], strides = [1, 1]} : vector<16x96xf32> to vector<8x8xf32>
    %83 = vector.extract_strided_slice %5 {offsets = [8, 32], sizes = [8, 8], strides = [1, 1]} : vector<16x96xf32> to vector<8x8xf32>
    %84 = vector.extract_strided_slice %5 {offsets = [8, 64], sizes = [8, 8], strides = [1, 1]} : vector<16x96xf32> to vector<8x8xf32>
    %cst_31 = arith.constant dense<0.000000e+00> : vector<8x8xf32>
    %85 = tpu.matmul %82, %83, %cst_31 {dimension_numbers = #tpu.dot_dimension_numbers<[1], [1], [0], [0], [0, 0, 1, 0], [], []>} : vector<8x8xf32>, vector<8x8xf32>, vector<8x8xf32> -> vector<8x8xf32>
    %cst_32 = arith.constant dense<0xFF800000> : vector<8xf32>
    %86 = vector.multi_reduction <maximumf>, %85, %cst_32 [1] : vector<8x8xf32> to vector<8xf32>
    %87 = vector.shape_cast %86 : vector<8xf32> to vector<8x1xf32>
    %88 = vector.broadcast %87 : vector<8x1xf32> to vector<8x8xf32>
    %89 = arith.subf %85, %88 : vector<8x8xf32>
    %90 = math.exp %89 : vector<8x8xf32>
    %cst_33 = arith.constant dense<0.000000e+00> : vector<8xf32>
    %91 = vector.multi_reduction <add>, %90, %cst_33 [1] : vector<8x8xf32> to vector<8xf32>
    %92 = vector.shape_cast %91 : vector<8xf32> to vector<8x1xf32>
    %93 = tpu.reciprocal %92 {approx = true} : vector<8x1xf32> -> vector<8x1xf32>
    %94 = vector.broadcast %93 : vector<8x1xf32> to vector<8x8xf32>
    %95 = arith.mulf %90, %94 : vector<8x8xf32>
    %cst_34 = arith.constant dense<0.000000e+00> : vector<8x8xf32>
    %96 = tpu.matmul %95, %84, %cst_34 {dimension_numbers = #tpu.dot_dimension_numbers<[1], [0], [0], [1], [0, 0, 1, 1], [], []>} : vector<8x8xf32>, vector<8x8xf32>, vector<8x8xf32> -> vector<8x8xf32>
    %97 = vector.extract_strided_slice %6 {offsets = [0, 0], sizes = [8, 32], strides = [1, 1]} : vector<32x32xf32> to vector<8x32xf32>
    %cst_35 = arith.constant dense<0.000000e+00> : vector<8x32xf32>
    %98 = tpu.matmul %96, %97, %cst_35 {dimension_numbers = #tpu.dot_dimension_numbers<[1], [0], [0], [1], [0, 0, 1, 1], [], []>} : vector<8x8xf32>, vector<8x32xf32>, vector<8x32xf32> -> vector<8x32xf32>
    %99 = vector.extract_strided_slice %5 {offsets = [8, 8], sizes = [8, 8], strides = [1, 1]} : vector<16x96xf32> to vector<8x8xf32>
    %100 = vector.extract_strided_slice %5 {offsets = [8, 40], sizes = [8, 8], strides = [1, 1]} : vector<16x96xf32> to vector<8x8xf32>
    %101 = vector.extract_strided_slice %5 {offsets = [8, 72], sizes = [8, 8], strides = [1, 1]} : vector<16x96xf32> to vector<8x8xf32>
    %cst_36 = arith.constant dense<0.000000e+00> : vector<8x8xf32>
    %102 = tpu.matmul %99, %100, %cst_36 {dimension_numbers = #tpu.dot_dimension_numbers<[1], [1], [0], [0], [0, 0, 1, 0], [], []>} : vector<8x8xf32>, vector<8x8xf32>, vector<8x8xf32> -> vector<8x8xf32>
    %cst_37 = arith.constant dense<0xFF800000> : vector<8xf32>
    %103 = vector.multi_reduction <maximumf>, %102, %cst_37 [1] : vector<8x8xf32> to vector<8xf32>
    %104 = vector.shape_cast %103 : vector<8xf32> to vector<8x1xf32>
    %105 = vector.broadcast %104 : vector<8x1xf32> to vector<8x8xf32>
    %106 = arith.subf %102, %105 : vector<8x8xf32>
    %107 = math.exp %106 : vector<8x8xf32>
    %cst_38 = arith.constant dense<0.000000e+00> : vector<8xf32>
    %108 = vector.multi_reduction <add>, %107, %cst_38 [1] : vector<8x8xf32> to vector<8xf32>
    %109 = vector.shape_cast %108 : vector<8xf32> to vector<8x1xf32>
    %110 = tpu.reciprocal %109 {approx = true} : vector<8x1xf32> -> vector<8x1xf32>
    %111 = vector.broadcast %110 : vector<8x1xf32> to vector<8x8xf32>
    %112 = arith.mulf %107, %111 : vector<8x8xf32>
    %cst_39 = arith.constant dense<0.000000e+00> : vector<8x8xf32>
    %113 = tpu.matmul %112, %101, %cst_39 {dimension_numbers = #tpu.dot_dimension_numbers<[1], [0], [0], [1], [0, 0, 1, 1], [], []>} : vector<8x8xf32>, vector<8x8xf32>, vector<8x8xf32> -> vector<8x8xf32>
    %114 = vector.extract_strided_slice %6 {offsets = [8, 0], sizes = [8, 32], strides = [1, 1]} : vector<32x32xf32> to vector<8x32xf32>
    %cst_40 = arith.constant dense<0.000000e+00> : vector<8x32xf32>
    %115 = tpu.matmul %113, %114, %cst_40 {dimension_numbers = #tpu.dot_dimension_numbers<[1], [0], [0], [1], [0, 0, 1, 1], [], []>} : vector<8x8xf32>, vector<8x32xf32>, vector<8x32xf32> -> vector<8x32xf32>
    %116 = arith.addf %98, %115 : vector<8x32xf32>
    %117 = vector.extract_strided_slice %5 {offsets = [8, 16], sizes = [8, 8], strides = [1, 1]} : vector<16x96xf32> to vector<8x8xf32>
    %118 = vector.extract_strided_slice %5 {offsets = [8, 48], sizes = [8, 8], strides = [1, 1]} : vector<16x96xf32> to vector<8x8xf32>
    %119 = vector.extract_strided_slice %5 {offsets = [8, 80], sizes = [8, 8], strides = [1, 1]} : vector<16x96xf32> to vector<8x8xf32>
    %cst_41 = arith.constant dense<0.000000e+00> : vector<8x8xf32>
    %120 = tpu.matmul %117, %118, %cst_41 {dimension_numbers = #tpu.dot_dimension_numbers<[1], [1], [0], [0], [0, 0, 1, 0], [], []>} : vector<8x8xf32>, vector<8x8xf32>, vector<8x8xf32> -> vector<8x8xf32>
    %cst_42 = arith.constant dense<0xFF800000> : vector<8xf32>
    %121 = vector.multi_reduction <maximumf>, %120, %cst_42 [1] : vector<8x8xf32> to vector<8xf32>
    %122 = vector.shape_cast %121 : vector<8xf32> to vector<8x1xf32>
    %123 = vector.broadcast %122 : vector<8x1xf32> to vector<8x8xf32>
    %124 = arith.subf %120, %123 : vector<8x8xf32>
    %125 = math.exp %124 : vector<8x8xf32>
    %cst_43 = arith.constant dense<0.000000e+00> : vector<8xf32>
    %126 = vector.multi_reduction <add>, %125, %cst_43 [1] : vector<8x8xf32> to vector<8xf32>
    %127 = vector.shape_cast %126 : vector<8xf32> to vector<8x1xf32>
    %128 = tpu.reciprocal %127 {approx = true} : vector<8x1xf32> -> vector<8x1xf32>
    %129 = vector.broadcast %128 : vector<8x1xf32> to vector<8x8xf32>
    %130 = arith.mulf %125, %129 : vector<8x8xf32>
    %cst_44 = arith.constant dense<0.000000e+00> : vector<8x8xf32>
    %131 = tpu.matmul %130, %119, %cst_44 {dimension_numbers = #tpu.dot_dimension_numbers<[1], [0], [0], [1], [0, 0, 1, 1], [], []>} : vector<8x8xf32>, vector<8x8xf32>, vector<8x8xf32> -> vector<8x8xf32>
    %132 = vector.extract_strided_slice %6 {offsets = [16, 0], sizes = [8, 32], strides = [1, 1]} : vector<32x32xf32> to vector<8x32xf32>
    %cst_45 = arith.constant dense<0.000000e+00> : vector<8x32xf32>
    %133 = tpu.matmul %131, %132, %cst_45 {dimension_numbers = #tpu.dot_dimension_numbers<[1], [0], [0], [1], [0, 0, 1, 1], [], []>} : vector<8x8xf32>, vector<8x32xf32>, vector<8x32xf32> -> vector<8x32xf32>
    %134 = arith.addf %116, %133 : vector<8x32xf32>
    %135 = vector.extract_strided_slice %5 {offsets = [8, 24], sizes = [8, 8], strides = [1, 1]} : vector<16x96xf32> to vector<8x8xf32>
    %136 = vector.extract_strided_slice %5 {offsets = [8, 56], sizes = [8, 8], strides = [1, 1]} : vector<16x96xf32> to vector<8x8xf32>
    %137 = vector.extract_strided_slice %5 {offsets = [8, 88], sizes = [8, 8], strides = [1, 1]} : vector<16x96xf32> to vector<8x8xf32>
    %cst_46 = arith.constant dense<0.000000e+00> : vector<8x8xf32>
    %138 = tpu.matmul %135, %136, %cst_46 {dimension_numbers = #tpu.dot_dimension_numbers<[1], [1], [0], [0], [0, 0, 1, 0], [], []>} : vector<8x8xf32>, vector<8x8xf32>, vector<8x8xf32> -> vector<8x8xf32>
    %cst_47 = arith.constant dense<0xFF800000> : vector<8xf32>
    %139 = vector.multi_reduction <maximumf>, %138, %cst_47 [1] : vector<8x8xf32> to vector<8xf32>
    %140 = vector.shape_cast %139 : vector<8xf32> to vector<8x1xf32>
    %141 = vector.broadcast %140 : vector<8x1xf32> to vector<8x8xf32>
    %142 = arith.subf %138, %141 : vector<8x8xf32>
    %143 = math.exp %142 : vector<8x8xf32>
    %cst_48 = arith.constant dense<0.000000e+00> : vector<8xf32>
    %144 = vector.multi_reduction <add>, %143, %cst_48 [1] : vector<8x8xf32> to vector<8xf32>
    %145 = vector.shape_cast %144 : vector<8xf32> to vector<8x1xf32>
    %146 = tpu.reciprocal %145 {approx = true} : vector<8x1xf32> -> vector<8x1xf32>
    %147 = vector.broadcast %146 : vector<8x1xf32> to vector<8x8xf32>
    %148 = arith.mulf %143, %147 : vector<8x8xf32>
    %cst_49 = arith.constant dense<0.000000e+00> : vector<8x8xf32>
    %149 = tpu.matmul %148, %137, %cst_49 {dimension_numbers = #tpu.dot_dimension_numbers<[1], [0], [0], [1], [0, 0, 1, 1], [], []>} : vector<8x8xf32>, vector<8x8xf32>, vector<8x8xf32> -> vector<8x8xf32>
    %150 = vector.extract_strided_slice %6 {offsets = [24, 0], sizes = [8, 32], strides = [1, 1]} : vector<32x32xf32> to vector<8x32xf32>
    %cst_50 = arith.constant dense<0.000000e+00> : vector<8x32xf32>
    %151 = tpu.matmul %149, %150, %cst_50 {dimension_numbers = #tpu.dot_dimension_numbers<[1], [0], [0], [1], [0, 0, 1, 1], [], []>} : vector<8x8xf32>, vector<8x32xf32>, vector<8x32xf32> -> vector<8x32xf32>
    %152 = arith.addf %134, %151 : vector<8x32xf32>
    %153 = vector.broadcast %7 : vector<1x32xf32> to vector<8x32xf32>
    %154 = arith.addf %152, %153 : vector<8x32xf32>
    %c8 = arith.constant 8 : index
    %c0_51 = arith.constant 0 : index
    %155 = vector.load %arg6[%c8, %c0_51] : memref<16x32xf32, #tpu.memory_space<vmem>>, vector<8x32xf32>
    tpu.vector_store %arg6[%c8, %c0_51], %154 {strides = array<i32>} : memref<16x32xf32, #tpu.memory_space<vmem>>, vector<8x32xf32>,
    return
  }
  func.func @transform_0(%arg0: i32) -> (i32, i32) {
    %c0_i32 = arith.constant 0 : i32
    %c0_i32_0 = arith.constant 0 : i32
    %c0_i32_1 = arith.constant 0 : i32
    return %c0_i32, %c0_i32_0 : i32, i32
  }
  func.func @transform_1(%arg0: i32) -> (i32, i32) {
    %c0_i32 = arith.constant 0 : i32
    %c0_i32_0 = arith.constant 0 : i32
    %c0_i32_1 = arith.constant 0 : i32
    return %c0_i32, %c0_i32_0 : i32, i32
  }
  func.func @transform_2(%arg0: i32) -> (i32, i32) {
    %c0_i32 = arith.constant 0 : i32
    %c0_i32_0 = arith.constant 0 : i32
    %c0_i32_1 = arith.constant 0 : i32
    return %c0_i32, %c0_i32_0 : i32, i32
  }
  func.func @transform_3(%arg0: i32) -> (i32, i32) {
    %c0_i32 = arith.constant 0 : i32
    %c0_i32_0 = arith.constant 0 : i32
    %c0_i32_1 = arith.constant 0 : i32
    return %c0_i32, %c0_i32_0 : i32, i32
  }
  func.func @transform_4(%arg0: i32) -> (i32, i32) {
    %c0_i32 = arith.constant 0 : i32
    %c0_i32_0 = arith.constant 0 : i32
    %c0_i32_1 = arith.constant 0 : i32
    return %c0_i32, %c0_i32_0 : i32, i32
  }
  func.func @transform_5(%arg0: i32) -> (i32, i32) {
    %c0_i32 = arith.constant 0 : i32
    %c0_i32_0 = arith.constant 0 : i32
    %c0_i32_1 = arith.constant 0 : i32
    return %c0_i32, %c0_i32_0 : i32, i32
  }
}

</mosaic_0001>

<bundles_post_ra>
// kernel: tpu_custom_call.1
= control target key start
LH: loop header
LB: loop body
LE: loop exit
PB: predicated region body
PF: predicated region fallthrough
CT: control target
= control target key end

     0   :  { %10 = vsyncpa [#allocation3], 0  ;;  %s2787_s0 = inlined_call_operand.hbm [shape: f32[16,32], index: 0, kind: input, shape index: {}]   ;;  %s2788_s1 = inlined_call_operand.hbm [shape: f32[32,96], index: 1, kind: input, shape index: {}]   ;;  %s2789_s2 = inlined_call_operand.vmem [shape: f32[1,96], index: 2, kind: input, shape index: {}]   ;;  %s2790_s3 = inlined_call_operand.hbm [shape: f32[32,32], index: 3, kind: input, shape index: {}]   ;;  %s2791_s4 = inlined_call_operand.vmem [shape: f32[1,32], index: 4, kind: input, shape index: {}]   ;;  %s2792_s5 = inlined_call_operand.hbm [shape: f32[16,32], index: 5, kind: output, shape index: {}]  }
   0x1   :  { %11 = vsyncpa [#allocation6], 0 }
   0x2   :  { %12 = vsyncpa [#allocation4], 0  ;;  %s2471_s18 = smov [#allocation5]   ;;  %s2472_s20 = smov [#allocation2]  }
   0x3   :  { %s30_s19 = sshll.u32 %s2471_s18, 4  ;;  %s18_s21 = sshll.u32 %s2472_s20, 4  ;;  %s31_s19 = int_to_ptr.vmem [resolvable:$true] %s30_s19  ;;  %s2520_s21 = int_to_ptr.vmem [resolvable:$true] %s18_s21 }
   0x4   :  { %s2377_s24 = scalar_lea.hbm %s2788_s1, 512 }
   0x5   :  { %p2378_p0 = scmp.ne.s32.totalorder %s2788_s1, %s2377_s24  ;;  %p2381_p1 = scmp.lt.u32.totalorder %s2377_s24, %s2788_s1 }
   0x7   :  { %p2383_p2 = pnand %p2381_p1, %p2378_p0 }
   0x9   :  { %2386 = shalt.err (!%p2383_p2)
}
   0xa   :  { %s2387_s29 = scalar_lea.vmem %s31_s19, 512  ;;  %p2392_p4 = scmp.lt.s32.totalorder %s31_s19, %s31_s19 }
   0xb   :  { %p2388_p3 = scmp.ne.s32.totalorder %s31_s19, %s2387_s29  ;;  %p2393_p5 = scmp.lt.s32.totalorder %s2387_s29, %s2387_s29 }
   0xd   :  { %p2394_p6 = por %p2393_p5, %p2392_p4 }
   0xf   :  { %p2395_p7 = pnand %p2394_p6, %p2388_p3 }
  0x11   :  { %2398 = shalt.err (!%p2395_p7)
}
  0x12   :  { %s2473_s30 = smov 128   ;;  %s2474_s6 = smov 8  }
  0x13   :  { %36 = dma.hbm_to_vmem [thread:$0]  %s2788_s1, 512, %s31_s19, [#allocation6], %s2473_s30, %s2473_s30, %s2474_s6  }
  0x14   :  { %s2399_s11 = scalar_lea.hbm %s2787_s0, 256 }
  0x15   :  { %p2400_p8 = scmp.ne.s32.totalorder %s2787_s0, %s2399_s11  ;;  %p2403_p9 = scmp.lt.u32.totalorder %s2399_s11, %s2787_s0 }
  0x17   :  { %p2405_p10 = pnand %p2403_p9, %p2400_p8 }
  0x19   :  { %2408 = shalt.err (!%p2405_p10)
}
  0x1a   :  { %s2409_s16 = scalar_lea.vmem %s2520_s21, 256  ;;  %p2414_p12 = scmp.lt.s32.totalorder %s2520_s21, %s2520_s21 }
  0x1b   :  { %p2410_p11 = scmp.ne.s32.totalorder %s2520_s21, %s2409_s16  ;;  %p2415_p13 = scmp.lt.s32.totalorder %s2409_s16, %s2409_s16 }
  0x1d   :  { %p2416_p0 = por %p2415_p13, %p2414_p12 }
  0x1f   :  { %p2417_p1 = pnand %p2416_p0, %p2410_p11 }
  0x21   :  { %2420 = shalt.err (!%p2417_p1)
}
  0x22   :  { %24 = dma.hbm_to_vmem [thread:$0]  %s2787_s0, 256, %s2520_s21, [#allocation3], %s2473_s30, %s2473_s30, %s2474_s6  }
  0x23   :  { %s2475_s18 = smov [#allocation7]   ;;  %s2421_s23 = scalar_lea.hbm %s2790_s3, 512 }
  0x24   :  { %s44_s19 = sshll.u32 %s2475_s18, 4  ;;  %p2422_p2 = scmp.ne.s32.totalorder %s2790_s3, %s2421_s23  ;;  %s45_s19 = int_to_ptr.vmem [resolvable:$true] %s44_s19 }
  0x25   :  { %p2425_p3 = scmp.lt.u32.totalorder %s2421_s23, %s2790_s3 }
  0x27   :  { %p2427_p4 = pnand %p2425_p3, %p2422_p2 }
  0x29   :  { %2430 = shalt.err (!%p2427_p4)
}
  0x2a   :  { %s2431_s28 = scalar_lea.vmem %s45_s19, 512  ;;  %p2436_p6 = scmp.lt.s32.totalorder %s45_s19, %s45_s19 }
  0x2b   :  { %p2432_p5 = scmp.ne.s32.totalorder %s45_s19, %s2431_s28  ;;  %p2437_p7 = scmp.lt.s32.totalorder %s2431_s28, %s2431_s28 }
  0x2d   :  { %p2438_p8 = por %p2437_p7, %p2436_p6 }
  0x2f   :  { %p2439_p9 = pnand %p2438_p8, %p2432_p5 }
  0x31   :  { %2442 = shalt.err (!%p2439_p9)
}
  0x32   :  { %50 = dma.hbm_to_vmem [thread:$0]  %s2790_s3, 512, %s45_s19, [#allocation6], %s2473_s30, %s2473_s30, %s2474_s6  }
  0x33   :  { %2465 = dma.done.wait [#allocation3], 256  }
  0x34   :  { %2466 = vsyncadd [#allocation3], 4294967040 }
  0x35   :  { %2467 = dma.done.wait [#allocation6], 1024  }
  0x36   :  { %2468 = vsyncadd [#allocation6], 4294966272  ;;  %vm75_vm0 = vcmask 261120   ;;  %v64_v0 = vld [vmem:[#allocation5] sm:$0xff]  ;;  %v65_v1 = vld [vmem:[#allocation5 + $0x8] sm:$0xff]  ;;  %v2476_v8 = vmov 0.0  }
  0x37   :  { %v66_v2 = vld [vmem:[#allocation5 + $0x10] sm:$0xff]  ;;  %v2318_v3 = vpack.c.bf16 %v65_v1, %v64_v0  ;;  %v67_v4 = vld [vmem:[#allocation5 + $0x18] sm:$0xff]  ;;  %2198 = vmatprep.subr.mxu1 %v2476_v8  ;;  %vm2477_vm1 = vmmov 0   ;;  %s2478_s7 = smov 120   ;;  %s2479_s8 = smov 96   ;;  %vm165_vm2 = vcmask 64512  }
  0x38   :  { %v62_v5 = vld [vmem:[#allocation2] sm:$0xff]  ;;  %v2322_v6 = vpack.c.bf16 %v67_v4, %v66_v2  ;;  %v63_v7 = vld [vmem:[#allocation2 + $0x8] sm:$0xff]  ;;  %2200 = vmatprep.mubr.msk.f32.mxu1 %vm2477_vm1, %v2476_v8  ;;  %s2480_s9 = smov 88   ;;  %s2482_s10 = smov 64   ;;  %v2616_v33 = vld [vmem:[#allocation7 + $0x8] sm:$0xff] }
  0x39   :  { %2195 = vmatprep.mubr.msk.f32.mxu0 %vm75_vm0, %v62_v5  ;;  %2319 = vmatprep.subr.bf16.mxu0 %v2318_v3  ;;  %v2097_v9 = vld [vmem:[%s2789_s2] ss:$0 sm:$0xff]  ;;  %s2481_s2 = smov 56   ;;  %s2483_s11 = smov 80   ;;  %v2628_v42 = vld [vmem:[#allocation7] sm:$0xff] }
  0x3a   :  { %2321 = vmatpush3.bf16.msra.mxu0 %v2318_v3  ;;  %s2484_s12 = smov 112   ;;  %s2485_s13 = smov 72   ;;  %v2662_v4 = vld [vmem:[#allocation7 + $0x10] sm:$0xff] }
  0x3b   :  { %2323 = vmatprep.subr.bf16.mxu0 %v2322_v6  ;;  %s2486_s14 = smov 104   ;;  %s2487_s15 = smov 48  }
  0x3c   :  { %s2488_s16 = smov 40  }
  0x3e   :  { %2325 = vmatpush3.bf16.msra.mxu0 %v2322_v6 }
  0x3f   :  { %2208 = vmatprep.subr.mxu0 %v2476_v8 }
  0x41   :  { %2196 = vmatmul.mubr.msk.f32.vlgmr.msra.gmra.mrb[0].mxu0 %vm75_vm0, %v63_v7 }
  0x42   :  { %2210 = vmatprep.mubr.msk.f32.mxu0 %vm2477_vm1, %v2476_v8 }
 0x114   :  { %v2197_v10 = vpop.f32.mrb[0].mxu0 }
 0x115   :  { %v2583_v11 = vadd.f32 %v2197_v10, %v2097_v9  ;;  %v148_v12 = vpop.f32.mrb[1].mxu0 }
 0x116   :  { %v2585_v13 = vadd.f32 %v2097_v9, %v148_v12 }
 0x118   :  { %327 = vrot.lane.b32.xlu1 %v2585_v13, %s2478_s7  ;;  %163 = vrot.lane.b32.xlu0 %v2585_v13, %s2479_s8 }
 0x11c   :  { %329 = vrot.lane.b32.xlu0 %v2585_v13, %s2480_s9 }
 0x18a   :  { %v164_v14 = vpop.permute.xlu0 %163  ;;  %v328_v16 = vpop.permute.xlu1 %327 }
 0x18b   :  { %2199 = vmatpush3.xpose.msk.msra.mxu1 %vm165_vm2, %v164_v14 }
 0x18c   :  { %2203 = vmatprep.subr.mxu1 %v2476_v8 }
 0x18e   :  { %2201 = vmatmul.mubr.msk.f32.vlgmr.msra.gmra.mrb[0].mxu1 %vm165_vm2, %v2585_v13  ;;  %v330_v15 = vpop.permute.xlu0 %329 }
 0x18f   :  { %2209 = vmatpush3.xpose.msk.msra.mxu0 %vm165_vm2, %v330_v15  ;;  %2205 = vmatprep.mubr.msk.f32.mxu1 %vm2477_vm1, %v2476_v8 }
 0x190   :  { %2218 = vmatprep.subr.mxu0 %v2476_v8 }
 0x192   :  { %2211 = vmatmul.mubr.msk.f32.vlgmr.msra.gmra.mrb[2].mxu0 %vm165_vm2, %v328_v16 }
 0x193   :  { %2220 = vmatprep.mubr.msk.f32.mxu0 %vm2477_vm1, %v2476_v8  ;;  %2219 = vmatpush3.msra.mxu0 %v2616_v33 }
 0x194   :  { %2228 = vmatprep.subr.mxu0 %v2476_v8 }
 0x261   :  { %v236_v17 = vpop.f32.mrb[0].mxu1 }
 0x262   :  { %v2202_v18 = vpop.f32.mrb[1].mxu1  ;;  %v240_v19 = vsel %vm165_vm2, %v236_v17, -inf }
 0x263   :  { %241 = vmax.xlane.f32.xlu1 %v240_v19 }
 0x265   :  { %v401_v20 = vpop.f32.mrb[2].mxu0 }
 0x266   :  { %v2212_v21 = vpop.f32.mrb[3].mxu0  ;;  %v405_v22 = vsel %vm165_vm2, %v401_v20, -inf }
 0x267   :  { %406 = vmax.xlane.f32.xlu0 %v405_v22 }
 0x2f0   :  { %v242_v23 = vpop.xlane.xlu1 %241 }
 0x2f1   :  { %v243_v24 = vsub.f32 %v236_v17, %v242_v23 }
 0x2f3   :  { %v244_v25 = vmul.f32 1.442695, %v243_v24 }
 0x2f4   :  { %v407_v26 = vpop.xlane.xlu0 %406 }
 0x2f5   :  { %2345 = vpow2.f32 %v244_v25  ;;  %v408_v27 = vsub.f32 %v401_v20, %v407_v26 }
 0x2f7   :  { %v409_v28 = vmul.f32 1.442695, %v408_v27  ;;  %v2694_v27 = vld [vmem:[#allocation7 + $0x18] sm:$0xff] }
 0x2f9   :  { %2347 = vpow2.f32 %v409_v28 }
 0x2ff   :  { %v2346_v29 = vpop.eup %2345 }
 0x300   :  { %v246_v30 = vsel %vm165_vm2, %v2346_v29, 0.0 }
 0x301   :  { %247 = vadd.xlane.f32.xlu0 %v246_v30 }
 0x303   :  { %v2348_v31 = vpop.eup %2347 }
 0x304   :  { %v411_v32 = vsel %vm165_vm2, %v2348_v31, 0.0 }
 0x305   :  { %412 = vadd.xlane.f32.xlu1 %v411_v32 }
 0x316   :  { %416 = vrot.lane.b32.xlu1 %v2585_v13, %s2481_s2 }
 0x317   :  { %251 = vrot.lane.b32.xlu0 %v2585_v13, %s2482_s10 }
 0x31a   :  { %640 = vrot.lane.b32.xlu1 %v2585_v13, %s2483_s11 }
 0x31b   :  { %638 = vrot.lane.b32.xlu0 %v2585_v13, %s2484_s12 }
 0x38e   :  { %v248_v34 = vpop.xlane.xlu0 %247 }
 0x38f   :  { %2349 = vrcp.f32 %v248_v34 }
 0x392   :  { %v413_v35 = vpop.xlane.xlu1 %412  ;;  %v252_v36 = vpop.permute.xlu0 %251 }
 0x393   :  { %2351 = vrcp.f32 %v413_v35  ;;  %2204 = vmatpush3.msra.mxu1 %v252_v36 }
 0x394   :  { %2213 = vmatprep.subr.mxu1 %v2476_v8 }
 0x396   :  { %v417_v39 = vpop.permute.xlu1 %416  ;;  %v639_v48 = vpop.permute.xlu0 %638 }
 0x399   :  { %v2350_v37 = vpop.eup %2349 }
 0x39a   :  { %v250_v38 = vmul.f32 %v2350_v37, %v2346_v29  ;;  %v641_v46 = vpop.permute.xlu1 %640 }
 0x39c   :  { %2206 = vmatmul.mubr.msk.f32.vlgmr.msra.gmra.mrb[2].mxu1 %vm165_vm2, %v250_v38 }
 0x39d   :  { %v2352_v40 = vpop.eup %2351  ;;  %2214 = vmatpush3.msra.mxu1 %v417_v39  ;;  %2215 = vmatprep.mubr.msk.f32.mxu1 %vm2477_vm1, %v2476_v8 }
 0x39e   :  { %v415_v41 = vmul.f32 %v2352_v40, %v2348_v31  ;;  %2223 = vmatprep.subr.mxu1 %v2476_v8 }
 0x3a0   :  { %2216 = vmatmul.mubr.msk.f32.vlgmr.msra.gmra.mrb[4].mxu1 %vm165_vm2, %v415_v41 }
 0x3a1   :  { %2225 = vmatprep.mubr.msk.f32.mxu1 %vm2477_vm1, %v2476_v8  ;;  %2224 = vmatpush3.msra.mxu1 %v2628_v42 }
 0x3a2   :  { %2233 = vmatprep.subr.mxu1 %v2476_v8 }
 0x46f   :  { %v323_v43 = vpop.f32.mrb[2].mxu1 }
 0x470   :  { %v2207_v44 = vpop.f32.mrb[3].mxu1  ;;  %2226 = vmatmul.mubr.msk.f32.vlgmr.msra.gmra.mrb[6].mxu1 %vm165_vm2, %v323_v43 }
 0x471   :  { %2235 = vmatprep.mubr.msk.f32.mxu1 %vm2477_vm1, %v2476_v8 }
 0x473   :  { %v488_v45 = vpop.f32.mrb[4].mxu1 }
 0x474   :  { %v2217_v47 = vpop.f32.mrb[5].mxu1  ;;  %2221 = vmatmul.mubr.msk.f32.vlgmr.msra.gmra.mrb[4].mxu0 %vm165_vm2, %v488_v45 }
 0x475   :  { %2229 = vmatpush3.xpose.msk.msra.mxu0 %vm165_vm2, %v641_v46  ;;  %2230 = vmatprep.mubr.msk.f32.mxu0 %vm2477_vm1, %v2476_v8 }
 0x476   :  { %2238 = vmatprep.subr.mxu0 %v2476_v8 }
 0x478   :  { %2231 = vmatmul.mubr.msk.f32.vlgmr.msra.gmra.mrb[6].mxu0 %vm165_vm2, %v639_v48  ;;  %v2717_v48 = vld [vmem:[%s2791_s4] ss:$0 sm:$0xff]  ;;  %s2489_s4 = smov [#allocation8]  }
 0x479   :  { %2240 = vmatprep.mubr.msk.f32.mxu0 %vm2477_vm1, %v2476_v8  ;;  %2239 = vmatpush3.msra.mxu0 %v2662_v4  ;;  %s2084_s18 = sshll.u32 %s2489_s4, 4  ;;  %s2085_s18 = int_to_ptr.vmem [resolvable:$true] %s2084_s18 }
 0x47a   :  { %2248 = vmatprep.subr.mxu0 %v2476_v8  ;;  %s2443_s19 = scalar_lea.vmem %s2085_s18, 256  ;;  %p2448_p11 = scmp.lt.s32.totalorder %s2085_s18, %s2085_s18 }
 0x47b   :  { %p2444_p10 = scmp.ne.s32.totalorder %s2085_s18, %s2443_s19  ;;  %p2449_p12 = scmp.lt.s32.totalorder %s2443_s19, %s2443_s19 }
 0x47d   :  { %p2450_p13 = por %p2449_p12, %p2448_p11 }
 0x47f   :  { %p2451_p0 = pnand %p2450_p13, %p2444_p10 }
 0x543   :  { %v634_v49 = vpop.f32.mrb[6].mxu1 }
 0x544   :  { %v2227_v50 = vpop.f32.mrb[7].mxu1 }
 0x547   :  { %v561_v51 = vpop.f32.mrb[4].mxu0 }
 0x548   :  { %v635_v52 = vadd.f32 %v634_v49, %v561_v51  ;;  %v2222_v53 = vpop.f32.mrb[5].mxu0 }
 0x54b   :  { %v712_v54 = vpop.f32.mrb[6].mxu0 }
 0x54c   :  { %v2232_v55 = vpop.f32.mrb[7].mxu0  ;;  %v716_v56 = vsel %vm165_vm2, %v712_v54, -inf }
 0x54d   :  { %717 = vmax.xlane.f32.xlu1 %v716_v56 }
 0x55e   :  { %879 = vrot.lane.b32.xlu1 %v2585_v13, %s2485_s13 }
 0x562   :  { %877 = vrot.lane.b32.xlu1 %v2585_v13, %s2486_s14 }
 0x566   :  { %1125 = vrot.lane.b32.xlu1 %v2583_v11, %s2479_s8 }
 0x5da   :  { %v718_v57 = vpop.xlane.xlu1 %717 }
 0x5db   :  { %v719_v58 = vsub.f32 %v712_v54, %v718_v57 }
 0x5dd   :  { %v720_v59 = vmul.f32 1.442695, %v719_v58 }
 0x5de   :  { %v880_v1 = vpop.permute.xlu1 %879 }
 0x5df   :  { %2353 = vpow2.f32 %v720_v59 }
 0x5e2   :  { %v878_v3 = vpop.permute.xlu1 %877 }
 0x5e6   :  { %v1126_v21 = vpop.permute.xlu1 %1125 }
 0x5e9   :  { %v2354_v60 = vpop.eup %2353 }
 0x5ea   :  { %v722_v61 = vsel %vm165_vm2, %v2354_v60, 0.0 }
 0x5eb   :  { %723 = vadd.xlane.f32.xlu0 %v722_v61 }
 0x601   :  { %727 = vrot.lane.b32.xlu0 %v2585_v13, %s2487_s15 }
 0x678   :  { %v724_v62 = vpop.xlane.xlu0 %723 }
 0x679   :  { %2355 = vrcp.f32 %v724_v62 }
 0x67c   :  { %v728_v63 = vpop.permute.xlu0 %727 }
 0x67d   :  { %2234 = vmatpush3.msra.mxu1 %v728_v63 }
 0x67e   :  { %2243 = vmatprep.subr.mxu1 %v2476_v8 }
 0x683   :  { %v2356_v0 = vpop.eup %2355 }
 0x684   :  { %v726_v2 = vmul.f32 %v2356_v0, %v2354_v60 }
 0x686   :  { %2236 = vmatmul.mubr.msk.f32.vlgmr.msra.gmra.mrb[8].mxu1 %vm165_vm2, %v726_v2 }
 0x687   :  { %2244 = vmatpush3.xpose.msk.msra.mxu1 %vm165_vm2, %v880_v1  ;;  %2245 = vmatprep.mubr.msk.f32.mxu1 %vm2477_vm1, %v2476_v8 }
 0x688   :  { %2253 = vmatprep.subr.mxu1 %v2476_v8 }
 0x68a   :  { %2246 = vmatmul.mubr.msk.f32.vlgmr.msra.gmra.mrb[10].mxu1 %vm165_vm2, %v878_v3 }
 0x68b   :  { %2255 = vmatprep.mubr.msk.f32.mxu1 %vm2477_vm1, %v2476_v8  ;;  %2254 = vmatpush3.msra.mxu1 %v2694_v27 }
 0x68c   :  { %2263 = vmatprep.subr.mxu1 %v2476_v8 }
 0x759   :  { %v799_v5 = vpop.f32.mrb[8].mxu1 }
 0x75a   :  { %v2237_v6 = vpop.f32.mrb[9].mxu1  ;;  %2241 = vmatmul.mubr.msk.f32.vlgmr.msra.gmra.mrb[8].mxu0 %vm165_vm2, %v799_v5 }
 0x75b   :  { %2250 = vmatprep.mubr.msk.f32.mxu0 %vm2477_vm1, %v2476_v8 }
 0x75d   :  { %v951_v7 = vpop.f32.mrb[10].mxu1 }
 0x75e   :  { %v2247_v9 = vpop.f32.mrb[11].mxu1  ;;  %v955_v10 = vsel %vm165_vm2, %v951_v7, -inf }
 0x75f   :  { %956 = vmax.xlane.f32.xlu0 %v955_v10 }
 0x775   :  { %966 = vrot.lane.b32.xlu0 %v2585_v13, %s2488_s16 }
 0x779   :  { %1290 = vrot.lane.b32.xlu0 %v2583_v11, %s2480_s9 }
 0x7ec   :  { %v957_v12 = vpop.xlane.xlu0 %956 }
 0x7ed   :  { %v958_v14 = vsub.f32 %v951_v7, %v957_v12 }
 0x7ef   :  { %v959_v15 = vmul.f32 1.442695, %v958_v14 }
 0x7f0   :  { %v967_v16 = vpop.permute.xlu0 %966 }
 0x7f1   :  { %2357 = vpow2.f32 %v959_v15  ;;  %2249 = vmatpush3.msra.mxu0 %v967_v16 }
 0x7f2   :  { %2258 = vmatprep.subr.mxu0 %v2476_v8 }
 0x7f4   :  { %v1291_v25 = vpop.permute.xlu0 %1290 }
 0x7fb   :  { %v2358_v17 = vpop.eup %2357 }
 0x7fc   :  { %v961_v18 = vsel %vm165_vm2, %v2358_v17, 0.0 }
 0x7fd   :  { %962 = vadd.xlane.f32.xlu1 %v961_v18 }
 0x80e   :  { %1288 = vrot.lane.b32.xlu1 %v2583_v11, %s2478_s7 }
 0x82d   :  { %v872_v19 = vpop.f32.mrb[8].mxu0 }
 0x82e   :  { %v876_v13 = vadd.f32 %v872_v19, %v635_v52  ;;  %v2242_v20 = vpop.f32.mrb[9].mxu0 }
 0x88a   :  { %v963_v22 = vpop.xlane.xlu1 %962 }
 0x88b   :  { %2359 = vrcp.f32 %v963_v22 }
 0x88e   :  { %v1289_v26 = vpop.permute.xlu1 %1288 }
 0x895   :  { %v2360_v23 = vpop.eup %2359 }
 0x896   :  { %v965_v24 = vmul.f32 %v2360_v23, %v2358_v17 }
 0x898   :  { %2251 = vmatmul.mubr.msk.f32.vlgmr.msra.gmra.mrb[10].mxu0 %vm165_vm2, %v965_v24 }
 0x899   :  { %2259 = vmatpush3.xpose.msk.msra.mxu0 %vm165_vm2, %v1126_v21  ;;  %2260 = vmatprep.mubr.msk.f32.mxu0 %vm2477_vm1, %v2476_v8 }
 0x89a   :  { %2268 = vmatprep.subr.mxu0 %v2476_v8 }
 0x89c   :  { %2261 = vmatmul.mubr.msk.f32.vlgmr.msra.gmra.mrb[12].mxu0 %vm165_vm2, %v2583_v11 }
 0x89d   :  { %2269 = vmatpush3.xpose.msk.msra.mxu0 %vm165_vm2, %v1291_v25  ;;  %2270 = vmatprep.mubr.msk.f32.mxu0 %vm2477_vm1, %v2476_v8 }
 0x89e   :  { %2278 = vmatprep.subr.mxu0 %v2476_v8 }
 0x8a0   :  { %2271 = vmatmul.mubr.msk.f32.vlgmr.msra.gmra.mrb[14].mxu0 %vm165_vm2, %v1289_v26 }
 0x8a1   :  { %2279 = vmatpush3.msra.mxu0 %v2616_v33  ;;  %2280 = vmatprep.mubr.msk.f32.mxu0 %vm2477_vm1, %v2476_v8 }
 0x8a2   :  { %2288 = vmatprep.subr.mxu0 %v2476_v8 }
 0x96b   :  { %v1038_v28 = vpop.f32.mrb[10].mxu0 }
 0x96c   :  { %v2252_v29 = vpop.f32.mrb[11].mxu0  ;;  %2256 = vmatmul.mubr.msk.f32.vlgmr.msra.gmra.mrb[12].mxu1 %vm165_vm2, %v1038_v28 }
 0x96d   :  { %2265 = vmatprep.mubr.msk.f32.mxu1 %vm2477_vm1, %v2476_v8 }
 0x96f   :  { %v1197_v30 = vpop.f32.mrb[12].mxu0 }
 0x970   :  { %v2262_v31 = vpop.f32.mrb[13].mxu0  ;;  %v1201_v32 = vsel %vm165_vm2, %v1197_v30, -inf }
 0x971   :  { %1202 = vmax.xlane.f32.xlu0 %v1201_v32 }
 0x973   :  { %v1362_v33 = vpop.f32.mrb[14].mxu0 }
 0x974   :  { %v2272_v34 = vpop.f32.mrb[15].mxu0  ;;  %v1366_v35 = vsel %vm165_vm2, %v1362_v33, -inf }
 0x975   :  { %1367 = vmax.xlane.f32.xlu1 %v1366_v35 }
 0x986   :  { %1212 = vrot.lane.b32.xlu1 %v2583_v11, %s2482_s10 }
 0x98a   :  { %1601 = vrot.lane.b32.xlu1 %v2583_v11, %s2483_s11 }
 0x98e   :  { %1599 = vrot.lane.b32.xlu1 %v2583_v11, %s2484_s12 }
 0x9fe   :  { %v1203_v36 = vpop.xlane.xlu0 %1202 }
 0x9ff   :  { %v1204_v37 = vsub.f32 %v1197_v30, %v1203_v36 }
 0xa01   :  { %v1205_v38 = vmul.f32 1.442695, %v1204_v37 }
 0xa02   :  { %v1368_v39 = vpop.xlane.xlu1 %1367 }
 0xa03   :  { %2361 = vpow2.f32 %v1205_v38  ;;  %v1369_v40 = vsub.f32 %v1362_v33, %v1368_v39 }
 0xa05   :  { %v1370_v41 = vmul.f32 1.442695, %v1369_v40 }
 0xa06   :  { %v1213_v43 = vpop.permute.xlu1 %1212 }
 0xa07   :  { %2363 = vpow2.f32 %v1370_v41  ;;  %2264 = vmatpush3.msra.mxu1 %v1213_v43 }
 0xa08   :  { %2273 = vmatprep.subr.mxu1 %v2476_v8 }
 0xa0a   :  { %v1602_v62 = vpop.permute.xlu1 %1601 }
 0xa0d   :  { %v2362_v44 = vpop.eup %2361 }
 0xa0e   :  { %v1207_v45 = vsel %vm165_vm2, %v2362_v44, 0.0 }
 0xa0f   :  { %1208 = vadd.xlane.f32.xlu0 %v1207_v45 }
 0xa11   :  { %v2364_v46 = vpop.eup %2363 }
 0xa12   :  { %v1372_v47 = vsel %vm165_vm2, %v2364_v46, 0.0 }
 0xa13   :  { %1373 = vadd.xlane.f32.xlu0 %v1372_v47 }
 0xa29   :  { %1377 = vrot.lane.b32.xlu0 %v2583_v11, %s2481_s2 }
 0xa3f   :  { %v1111_v49 = vpop.f32.mrb[12].mxu1 }
 0xa40   :  { %v1115_v50 = vadd.f32 %v1111_v49, %v876_v13  ;;  %v2257_v51 = vpop.f32.mrb[13].mxu1 }
 0xa42   :  { %v1122_v52 = vadd.f32 %v2717_v48, %v1115_v50 }
 0xa44   :  { %1123 = vst.msk [vmem:[#allocation8] sm:$0xff] %vm75_vm0, %v1122_v52 }
 0xa9c   :  { %v1209_v53 = vpop.xlane.xlu0 %1208 }
 0xa9d   :  { %2365 = vrcp.f32 %v1209_v53 }
 0xaa0   :  { %v1374_v54 = vpop.xlane.xlu0 %1373 }
 0xaa1   :  { %2367 = vrcp.f32 %v1374_v54 }
 0xaa4   :  { %v1378_v57 = vpop.permute.xlu0 %1377 }
 0xaa7   :  { %v2366_v55 = vpop.eup %2365 }
 0xaa8   :  { %v1211_v56 = vmul.f32 %v2366_v55, %v2362_v44 }
 0xaaa   :  { %2266 = vmatmul.mubr.msk.f32.vlgmr.msra.gmra.mrb[14].mxu1 %vm165_vm2, %v1211_v56 }
 0xaab   :  { %v2368_v58 = vpop.eup %2367  ;;  %2274 = vmatpush3.msra.mxu1 %v1378_v57  ;;  %2275 = vmatprep.mubr.msk.f32.mxu1 %vm2477_vm1, %v2476_v8 }
 0xaac   :  { %v1376_v59 = vmul.f32 %v2368_v58, %v2364_v46  ;;  %2283 = vmatprep.subr.mxu1 %v2476_v8 }
 0xaae   :  { %2276 = vmatmul.mubr.msk.f32.vlgmr.msra.gmra.mrb[16].mxu1 %vm165_vm2, %v1376_v59 }
 0xaaf   :  { %2284 = vmatpush3.msra.mxu1 %v2628_v42  ;;  %2285 = vmatprep.mubr.msk.f32.mxu1 %vm2477_vm1, %v2476_v8  ;;  %v1600_v42 = vpop.permute.xlu1 %1599 }
 0xab0   :  { %2293 = vmatprep.subr.mxu1 %v2476_v8 }
 0xb7d   :  { %v1284_v60 = vpop.f32.mrb[14].mxu1 }
 0xb7e   :  { %v2267_v61 = vpop.f32.mrb[15].mxu1  ;;  %2286 = vmatmul.mubr.msk.f32.vlgmr.msra.gmra.mrb[18].mxu1 %vm165_vm2, %v1284_v60 }
 0xb7f   :  { %2295 = vmatprep.mubr.msk.f32.mxu1 %vm2477_vm1, %v2476_v8 }
 0xb81   :  { %v1449_v63 = vpop.f32.mrb[16].mxu1 }
 0xb82   :  { %v2277_v0 = vpop.f32.mrb[17].mxu1  ;;  %2281 = vmatmul.mubr.msk.f32.vlgmr.msra.gmra.mrb[16].mxu0 %vm165_vm2, %v1449_v63 }
 0xb83   :  { %2289 = vmatpush3.xpose.msk.msra.mxu0 %vm165_vm2, %v1602_v62  ;;  %2290 = vmatprep.mubr.msk.f32.mxu0 %vm2477_vm1, %v2476_v8 }
 0xb84   :  { %2298 = vmatprep.subr.mxu0 %v2476_v8 }
 0xb86   :  { %2291 = vmatmul.mubr.msk.f32.vlgmr.msra.gmra.mrb[18].mxu0 %vm165_vm2, %v1600_v42 }
 0xb87   :  { %2299 = vmatpush3.msra.mxu0 %v2662_v4  ;;  %2300 = vmatprep.mubr.msk.f32.mxu0 %vm2477_vm1, %v2476_v8 }
 0xb88   :  { %2308 = vmatprep.subr.mxu0 %v2476_v8 }
 0xc51   :  { %v1595_v1 = vpop.f32.mrb[18].mxu1 }
 0xc52   :  { %v2287_v2 = vpop.f32.mrb[19].mxu1 }
 0xc55   :  { %v1522_v3 = vpop.f32.mrb[16].mxu0 }
 0xc56   :  { %v1596_v5 = vadd.f32 %v1595_v1, %v1522_v3  ;;  %v2282_v6 = vpop.f32.mrb[17].mxu0 }
 0xc59   :  { %v1673_v7 = vpop.f32.mrb[18].mxu0 }
 0xc5a   :  { %v2292_v9 = vpop.f32.mrb[19].mxu0  ;;  %v1677_v10 = vsel %vm165_vm2, %v1673_v7, -inf }
 0xc5b   :  { %1678 = vmax.xlane.f32.xlu0 %v1677_v10 }
 0xc71   :  { %1688 = vrot.lane.b32.xlu0 %v2583_v11, %s2487_s15 }
 0xc75   :  { %1838 = vrot.lane.b32.xlu0 %v2583_v11, %s2486_s14 }
 0xce8   :  { %v1679_v4 = vpop.xlane.xlu0 %1678 }
 0xce9   :  { %v1680_v12 = vsub.f32 %v1673_v7, %v1679_v4 }
 0xceb   :  { %v1681_v14 = vmul.f32 1.442695, %v1680_v12 }
 0xcec   :  { %v1689_v15 = vpop.permute.xlu0 %1688 }
 0xced   :  { %2369 = vpow2.f32 %v1681_v14  ;;  %2294 = vmatpush3.msra.mxu1 %v1689_v15 }
 0xcee   :  { %2303 = vmatprep.subr.mxu1 %v2476_v8 }
 0xcf0   :  { %v1839_v21 = vpop.permute.xlu0 %1838 }
 0xcf7   :  { %v2370_v16 = vpop.eup %2369 }
 0xcf8   :  { %v1683_v17 = vsel %vm165_vm2, %v2370_v16, 0.0 }
 0xcf9   :  { %1684 = vadd.xlane.f32.xlu1 %v1683_v17 }
 0xd0a   :  { %1840 = vrot.lane.b32.xlu1 %v2583_v11, %s2485_s13 }
 0xd86   :  { %v1685_v18 = vpop.xlane.xlu1 %1684 }
 0xd87   :  { %2371 = vrcp.f32 %v1685_v18 }
 0xd8a   :  { %v1841_v20 = vpop.permute.xlu1 %1840 }
 0xd91   :  { %v2372_v19 = vpop.eup %2371 }
 0xd92   :  { %v1687_v13 = vmul.f32 %v2372_v19, %v2370_v16 }
 0xd94   :  { %2296 = vmatmul.mubr.msk.f32.vlgmr.msra.gmra.mrb[20].mxu1 %vm165_vm2, %v1687_v13 }
 0xd95   :  { %2304 = vmatpush3.xpose.msk.msra.mxu1 %vm165_vm2, %v1841_v20  ;;  %2305 = vmatprep.mubr.msk.f32.mxu1 %vm2477_vm1, %v2476_v8 }
 0xd96   :  { %2313 = vmatprep.subr.mxu1 %v2476_v8 }
 0xd98   :  { %2306 = vmatmul.mubr.msk.f32.vlgmr.msra.gmra.mrb[22].mxu1 %vm165_vm2, %v1839_v21 }
 0xd99   :  { %2314 = vmatpush3.msra.mxu1 %v2694_v27  ;;  %2315 = vmatprep.mubr.msk.f32.mxu1 %vm2477_vm1, %v2476_v8 }
 0xe67   :  { %v1760_v22 = vpop.f32.mrb[20].mxu1 }
 0xe68   :  { %v2297_v23 = vpop.f32.mrb[21].mxu1  ;;  %2301 = vmatmul.mubr.msk.f32.vlgmr.msra.gmra.mrb[20].mxu0 %vm165_vm2, %v1760_v22 }
 0xe69   :  { %2310 = vmatprep.mubr.msk.f32.mxu0 %vm2477_vm1, %v2476_v8 }
 0xe6b   :  { %v1912_v24 = vpop.f32.mrb[22].mxu1 }
 0xe6c   :  { %v2307_v25 = vpop.f32.mrb[23].mxu1  ;;  %v1916_v26 = vsel %vm165_vm2, %v1912_v24, -inf }
 0xe6d   :  { %1917 = vmax.xlane.f32.xlu1 %v1916_v26 }
 0xefa   :  { %v1918_v28 = vpop.xlane.xlu1 %1917 }
 0xefb   :  { %v1919_v29 = vsub.f32 %v1912_v24, %v1918_v28 }
 0xefd   :  { %v1920_v30 = vmul.f32 1.442695, %v1919_v29 }
 0xeff   :  { %2373 = vpow2.f32 %v1920_v30 }
 0xf09   :  { %v2374_v27 = vpop.eup %2373 }
 0xf0a   :  { %v1922_v31 = vsel %vm165_vm2, %v2374_v27, 0.0 }
 0xf0b   :  { %1923 = vadd.xlane.f32.xlu0 %v1922_v31 }
 0xf21   :  { %1927 = vrot.lane.b32.xlu0 %v2583_v11, %s2488_s16 }
 0xf3b   :  { %v1833_v32 = vpop.f32.mrb[20].mxu0 }
 0xf3c   :  { %v1837_v33 = vadd.f32 %v1833_v32, %v1596_v5  ;;  %v2302_v34 = vpop.f32.mrb[21].mxu0 }
 0xf98   :  { %v1924_v8 = vpop.xlane.xlu0 %1923 }
 0xf99   :  { %2375 = vrcp.f32 %v1924_v8 }
 0xf9c   :  { %v1928_v35 = vpop.permute.xlu0 %1927 }
 0xf9d   :  { %2309 = vmatpush3.msra.mxu0 %v1928_v35 }
 0xfa3   :  { %v2376_v36 = vpop.eup %2375 }
 0xfa4   :  { %v1926_v37 = vmul.f32 %v2376_v36, %v2374_v27 }
 0xfa6   :  { %2311 = vmatmul.mubr.msk.f32.vlgmr.msra.gmra.mrb[22].mxu0 %vm165_vm2, %v1926_v37 }
0x1079   :  { %v1999_v38 = vpop.f32.mrb[22].mxu0 }
0x107a   :  { %v2312_v39 = vpop.f32.mrb[23].mxu0  ;;  %2316 = vmatmul.mubr.msk.f32.vlgmr.msra.gmra.mrb[24].mxu1 %vm165_vm2, %v1999_v38 }
0x114d   :  { %v2072_v40 = vpop.f32.mrb[24].mxu1 }
0x114e   :  { %v2076_v41 = vadd.f32 %v2072_v40, %v1837_v33  ;;  %v2317_v11 = vpop.f32.mrb[25].mxu1 }
0x1150   :  { %v2077_v43 = vadd.f32 %v2717_v48, %v2076_v41 }
0x1152   :  { %2078 = vst.msk [vmem:[#allocation8 + $0x8] sm:$0xff] %vm75_vm0, %v2077_v43 }
0x1153   :  { %2454 = shalt.err (!%p2451_p0)
}
0x1154   :  { %s2455_s23 = scalar_lea.hbm %s2792_s5, 256 }
0x1155   :  { %p2456_p1 = scmp.ne.s32.totalorder %s2792_s5, %s2455_s23  ;;  %p2459_p2 = scmp.lt.u32.totalorder %s2455_s23, %s2792_s5 }
0x1157   :  { %p2461_p3 = pnand %p2459_p2, %p2456_p1 }
0x1159   :  { %2464 = shalt.err (!%p2461_p3)
}
0x115a   :  { %2090 = dma.vmem_to_hbm [thread:$0]  %s2085_s18, 256, %s2792_s5, [#allocation4], %s2473_s30, %s2473_s30, %s2474_s6  }
0x115b   :  { %2469 = dma.done.wait [#allocation4], 256  }
0x115c   :  { %2470 = vsyncadd [#allocation4], 4294967040 }
0x115d   :  { %2094 = vsyncpa [#allocation3], 1 }
0x115e   :  { %2095 = vsyncpa [#allocation6], 1 }
0x115f   :  { %2096 = vsyncpa [#allocation4], 1 }

</bundles_post_ra>
